<compile_context>
chip_gen: v7x
topology: tpu7x:2x2x1
jax: 0.10.0
libtpu: 0.0.40
codegen_flags: <defaults>
</compile_context>

<pallas_src>
import jax
import jax.numpy as jnp
import numpy as np
from jax.experimental import pallas as pl
from jax.experimental.pallas import tpu as pltpu


def _round_up(x, m):
    return ((x + m - 1) // m) * m


def _ceil_div(a, b):
    return -(-a // b)


def _make_si_kernel(tb, tn, ppc, batch, n_pix, need_row_mask, need_col_mask):
    """Kernel over blocks (tb, tn) of the flattened (B, H*W) inputs.

    Outputs are lane-dense (tb, 128) per-item partial sums, resident across the
    innermost pixel-tile axis:
        sq_ref  += sum over this tile's lane-groups of diff^2   (folded to 128 lanes)
        lin_ref += sum over this tile's lane-groups of diff     (folded to 128 lanes)
    """
    nlg = tn // 128  # lane groups per block

    def kernel(yp_ref, yt_ref, sq_ref, lin_ref):
        c = pl.program_id(0)    # pixel-chunk (parallel)
        bt = pl.program_id(1)   # batch tile  (parallel)
        pt = pl.program_id(2)   # pixel tile inside chunk (reduction, innermost)

        @pl.when(pt == 0)
        def _init():
            sq_ref[...] = jnp.zeros_like(sq_ref)
            lin_ref[...] = jnp.zeros_like(lin_ref)

        # Global (unclamped) pixel-tile index; duplicate/overshoot tiles from the
        # clamped index_map land fully outside [0, n_pix) and are masked to zero.
        gt = c * ppc + pt
        col_base = gt * tn

        row_ok = None
        if need_row_mask:
            row_ids = jax.lax.broadcasted_iota(jnp.int32, (tb, 128), 0)
            row_ok = (bt * tb + row_ids) < batch
        col_ids = None
        if need_col_mask:
            col_ids = jax.lax.broadcasted_iota(jnp.int32, (tb, 128), 1)

        sq_acc = jnp.zeros((tb, 128), jnp.float32)
        lin_acc = jnp.zeros((tb, 128), jnp.float32)

        # Unrolled fold over 128-lane groups: each iteration is a pair of
        # (tb, 128) loads + a handful of VPU ops; no XLU cross-lane work and no
        # narrow masked stores in the hot loop.
        for j in range(nlg):
            yp_j = yp_ref[:, pl.ds(j * 128, 128)].astype(jnp.float32)
            yt_j = yt_ref[:, pl.ds(j * 128, 128)].astype(jnp.float32)
            d = yp_j - yt_j

            mask = None
            if need_col_mask:
                mask = (col_base + j * 128 + col_ids) < n_pix
            if need_row_mask:
                mask = row_ok if mask is None else (mask & row_ok)
            if mask is not None:
                d = jnp.where(mask, d, 0.0)

            sq_acc = sq_acc + d * d
            lin_acc = lin_acc + d

        sq_ref[...] += sq_acc
        lin_ref[...] += lin_acc

    return kernel


def shift_invariant_loss(y_pred, y_true, lam=0.5, target_block_bytes=4 * 1024 * 1024):
    """Pallas TPU implementation of ShiftInvariantLoss.forward on (B, H, W) inputs."""
    assert y_pred.shape == y_true.shape and y_pred.ndim == 3
    B, H, W = y_true.shape
    n_pix = H * W

    # Lane-dense flatten (free on contiguous data).  Keep 16-bit dtypes native so
    # the kernel streams half the bytes; anything exotic falls back to f32.
    yp = y_pred.reshape(B, n_pix)
    yt = y_true.reshape(B, n_pix)
    _ok = (jnp.float32, jnp.bfloat16, jnp.float16)
    if yp.dtype not in _ok:
        yp = yp.astype(jnp.float32)
    if yt.dtype not in _ok:
        yt = yt.astype(jnp.float32)

    # ---- tile sizing -------------------------------------------------------
    # Sublane multiple: 8 for f32, 16 if any input is 16-bit.
    sub = 16 if min(yp.dtype.itemsize, yt.dtype.itemsize) == 2 else 8
    # Block budget counted in f32-equivalent elements (keeps the in-kernel f32
    # working set constant regardless of input dtype).
    elems = max(sub * 128, target_block_bytes // 4)
    MAX_TN = 128 * 128                      # cap lane groups per block (unroll depth)
    tn = min(_round_up(n_pix, 128), MAX_TN)
    tb = max(sub, min(_round_up(B, sub), (elems // tn) // sub * sub))

    num_bt = _ceil_div(B, tb)
    num_pt = _ceil_div(n_pix, tn)
    # Guarantee >= 2 parallel grid blocks (v7x has 2 TensorCores) by splitting the
    # pixel range into 2 chunks when the whole batch fits in one batch tile.
    n_chunks = 2 if (num_bt == 1 and num_pt >= 2) else 1
    ppc = _ceil_div(num_pt, n_chunks)

    need_row_mask = (B % tb) != 0
    need_col_mask = (n_pix % tn != 0) or (n_chunks * ppc != num_pt)

    grid = (n_chunks, num_bt, ppc)
    out_rows = n_chunks * num_bt * tb

    # VMEM budget: 2 inputs x 2 pipeline buffers x block + f32 temporaries, with
    # headroom; capped at 75% of the physical VMEM reported for this chip.
    block_f32_bytes = tb * tn * 4
    try:
        vmem_cap = int(pltpu.get_tpu_info().vmem_capacity_bytes)
    except Exception:
        vmem_cap = 64 * 2**20               # conservative (v7x) fallback
    vmem_limit = int(min((vmem_cap * 3) // 4,
                         max(32 * 2**20, 6 * block_f32_bytes)))

    def _in_map(c, bt, pt):
        # Clamp so an overshoot tile of the last chunk stays in bounds; its data
        # is a duplicate of the last real tile and is fully masked in the kernel.
        return (bt, jnp.minimum(c * ppc + pt, num_pt - 1))

    def _out_map(c, bt, pt):
        return (c * num_bt + bt, 0)

    kernel = _make_si_kernel(tb, tn, ppc, B, n_pix, need_row_mask, need_col_mask)

    sq_out, lin_out = pl.pallas_call(
        kernel,
        out_shape=(
            jax.ShapeDtypeStruct((out_rows, 128), jnp.float32),  # per-item partial sum(diff^2)
            jax.ShapeDtypeStruct((out_rows, 128), jnp.float32),  # per-item partial sum(diff)
        ),
        grid_spec=pltpu.PrefetchScalarGridSpec(
            num_scalar_prefetch=0,
            grid=grid,
            in_specs=[
                pl.BlockSpec((tb, tn), _in_map),
                pl.BlockSpec((tb, tn), _in_map),
            ],
            out_specs=[
                pl.BlockSpec((tb, 128), _out_map),
                pl.BlockSpec((tb, 128), _out_map),
            ],
        ),
        compiler_params=pltpu.CompilerParams(
            dimension_semantics=("parallel", "parallel", "arbitrary"),
            vmem_limit_bytes=vmem_limit,
        ),
    )(yp, yt)

    # Tiny scalar combine in plain JAX: fold chunks + lanes, then the loss formula.
    # TODO(synk): could be folded into the kernel via a (1,1) SMEM output to shave
    # a few us of XLA op launch overhead for very small inputs.
    sq_items = jnp.sum(sq_out.reshape(n_chunks, num_bt * tb, 128), axis=(0, 2))[:B]
    lin_items = jnp.sum(lin_out.reshape(n_chunks, num_bt * tb, 128), axis=(0, 2))[:B]

    n = jnp.float32(n_pix)
    left = jnp.sum(sq_items) / (jnp.float32(B) * n)        # mean(diff^2)
    right = jnp.sum(lin_items * lin_items) / jnp.float32(B)  # mean_b((sum diff)^2)
    return left - jnp.float32(lam) / (n * n) * right


def _reference_loss(y_pred, y_true, lam=0.5):
    # Pure-JAX mirror of the PyTorch module (for verification).
    n = y_true.shape[-1] * y_true.shape[-2]
    diff = y_pred - y_true
    left_term = jnp.mean(diff ** 2)
    right_term = jnp.sum(diff, axis=(1, 2)) ** 2
    loss_per_item = left_term - lam / n ** 2 * right_term
    return jnp.mean(loss_per_item)


if __name__ == "__main__":
    key = jax.random.PRNGKey(0)
    k1, k2, k3, k4 = jax.random.split(key, 4)

    # 1) Small aligned case.
    B, H, W = 2, 16, 16
    y_pred = jax.random.normal(k1, (B, H, W), dtype=jnp.float32)
    y_true = jax.random.normal(k2, (B, H, W), dtype=jnp.float32)
    loss = jax.block_until_ready(shift_invariant_loss(y_pred, y_true, lam=0.5))
    ref = jax.block_until_ready(_reference_loss(y_pred, y_true, lam=0.5))
    np.testing.assert_allclose(np.asarray(loss), np.asarray(ref), rtol=1e-5, atol=1e-6)

    # 2) Ragged case (B % 8 != 0, n_pix % 128 != 0): exercises the in-kernel
    #    row/column masks that replaced the jnp.pad pass.
    B2, H2, W2 = 3, 17, 19
    yp2 = jax.random.normal(k3, (B2, H2, W2), dtype=jnp.float32)
    yt2 = jax.random.normal(k4, (B2, H2, W2), dtype=jnp.float32)
    loss2 = jax.block_until_ready(shift_invariant_loss(yp2, yt2, lam=0.5))
    ref2 = jax.block_until_ready(_reference_loss(yp2, yt2, lam=0.5))
    np.testing.assert_allclose(np.asarray(loss2), np.asarray(ref2), rtol=1e-5, atol=1e-6)

    # 3) bf16 inputs stream natively (half HBM traffic); accumulation stays f32.
    yp3 = yp2.astype(jnp.bfloat16)
    yt3 = yt2.astype(jnp.bfloat16)
    loss3 = jax.block_until_ready(shift_invariant_loss(yp3, yt3, lam=0.5))
    ref3 = jax.block_until_ready(
        _reference_loss(yp3.astype(jnp.float32), yt3.astype(jnp.float32), lam=0.5))
    np.testing.assert_allclose(np.asarray(loss3), np.asarray(ref3), rtol=1e-4, atol=1e-5)

    print("KERNEL_OK")
</pallas_src>

<mosaic_0001>
module attributes {stable_mosaic.version = 11 : i64} {
  func.func @kernel(%arg0: i32, %arg1: i32, %arg2: i32, %arg3: memref<8x256xf32, #tpu.memory_space<vmem>>, %arg4: memref<8x256xf32, #tpu.memory_space<vmem>>, %arg5: memref<8x128xf32, #tpu.memory_space<vmem>>, %arg6: memref<8x128xf32, #tpu.memory_space<vmem>>) attributes {dimension_semantics = [#tpu.dimension_semantics<parallel>, #tpu.dimension_semantics<parallel>, #tpu.dimension_semantics<arbitrary>], iteration_bounds = array<i64: 1, 1, 1>, scalar_prefetch = 0 : i64, scratch_operands = 0 : i64, tpu.core_type = #tpu.core_type<tc>, window_params = [{transform_indices = @transform_0, window_bounds = array<i64: 8, 256>}, {transform_indices = @transform_1, window_bounds = array<i64: 8, 256>}, {transform_indices = @transform_2, window_bounds = array<i64: 8, 128>}, {transform_indices = @transform_3, window_bounds = array<i64: 8, 128>}]} {
    %c0_i32 = arith.constant 0 : i32
    %0 = arith.cmpi eq, %arg2, %c0_i32 : i32
    %1 = arith.extui %0 : i1 to i32
    %c0_i32_0 = arith.constant 0 : i32
    %2 = arith.cmpi ne, %1, %c0_i32_0 : i32
    scf.if %2 {
      %cst_18 = arith.constant 0.000000e+00 : f32
      %33 = vector.broadcast %cst_18 : f32 to vector<8x128xf32>
      %c0_19 = arith.constant 0 : index
      %c0_20 = arith.constant 0 : index
      %34 = vector.load %arg5[%c0_19, %c0_20] : memref<8x128xf32, #tpu.memory_space<vmem>>, vector<8x128xf32>
      tpu.vector_store %arg5[%c0_19, %c0_20], %33 {strides = array<i32>} : memref<8x128xf32, #tpu.memory_space<vmem>>, vector<8x128xf32>,
      %cst_21 = arith.constant 0.000000e+00 : f32
      %35 = vector.broadcast %cst_21 : f32 to vector<8x128xf32>
      %c0_22 = arith.constant 0 : index
      %c0_23 = arith.constant 0 : index
      %36 = vector.load %arg6[%c0_22, %c0_23] : memref<8x128xf32, #tpu.memory_space<vmem>>, vector<8x128xf32>
      tpu.vector_store %arg6[%c0_22, %c0_23], %35 {strides = array<i32>} : memref<8x128xf32, #tpu.memory_space<vmem>>, vector<8x128xf32>,
    } else {
    }
    %3 = tpu.iota {dimensions = array<i32: 0>} : vector<8x128xi32>
    %c8_i32 = arith.constant 8 : i32
    %4 = arith.muli %arg1, %c8_i32 : i32
    %5 = vector.broadcast %4 : i32 to vector<8x128xi32>
    %6 = arith.addi %5, %3 : vector<8x128xi32>
    %c2_i32 = arith.constant 2 : i32
    %7 = vector.broadcast %c2_i32 : i32 to vector<8x128xi32>
    %8 = arith.cmpi slt, %6, %7 : vector<8x128xi32>
    %cst = arith.constant 0.000000e+00 : f32
    %9 = vector.broadcast %cst : f32 to vector<8x128xf32>
    %cst_1 = arith.constant 0.000000e+00 : f32
    %10 = vector.broadcast %cst_1 : f32 to vector<8x128xf32>
    %c0 = arith.constant 0 : index
    %c0_2 = arith.constant 0 : index
    %11 = vector.load %arg3[%c0, %c0_2] : memref<8x256xf32, #tpu.memory_space<vmem>>, vector<8x128xf32>
    %c0_3 = arith.constant 0 : index
    %c0_4 = arith.constant 0 : index
    %12 = vector.load %arg4[%c0_3, %c0_4] : memref<8x256xf32, #tpu.memory_space<vmem>>, vector<8x128xf32>
    %13 = arith.subf %11, %12 : vector<8x128xf32>
    %cst_5 = arith.constant 0.000000e+00 : f32
    %14 = vector.broadcast %cst_5 : f32 to vector<8x128xf32>
    %15 = arith.select %8, %13, %14 : vector<8x128xi1>, vector<8x128xf32>
    %16 = arith.mulf %15, %15 : vector<8x128xf32>
    %17 = arith.addf %9, %16 : vector<8x128xf32>
    %18 = arith.addf %10, %15 : vector<8x128xf32>
    %c0_6 = arith.constant 0 : index
    %c128 = arith.constant 128 : index
    %19 = vector.load %arg3[%c0_6, %c128] : memref<8x256xf32, #tpu.memory_space<vmem>>, vector<8x128xf32>
    %c0_7 = arith.constant 0 : index
    %c128_8 = arith.constant 128 : index
    %20 = vector.load %arg4[%c0_7, %c128_8] : memref<8x256xf32, #tpu.memory_space<vmem>>, vector<8x128xf32>
    %21 = arith.subf %19, %20 : vector<8x128xf32>
    %cst_9 = arith.constant 0.000000e+00 : f32
    %22 = vector.broadcast %cst_9 : f32 to vector<8x128xf32>
    %23 = arith.select %8, %21, %22 : vector<8x128xi1>, vector<8x128xf32>
    %24 = arith.mulf %23, %23 : vector<8x128xf32>
    %25 = arith.addf %17, %24 : vector<8x128xf32>
    %26 = arith.addf %18, %23 : vector<8x128xf32>
    %c0_10 = arith.constant 0 : index
    %c0_11 = arith.constant 0 : index
    %27 = vector.load %arg5[%c0_10, %c0_11] : memref<8x128xf32, #tpu.memory_space<vmem>>, vector<8x128xf32>
    %28 = arith.addf %27, %25 : vector<8x128xf32>
    %c0_12 = arith.constant 0 : index
    %c0_13 = arith.constant 0 : index
    %29 = vector.load %arg5[%c0_12, %c0_13] : memref<8x128xf32, #tpu.memory_space<vmem>>, vector<8x128xf32>
    tpu.vector_store %arg5[%c0_12, %c0_13], %28 {strides = array<i32>} : memref<8x128xf32, #tpu.memory_space<vmem>>, vector<8x128xf32>,
    %c0_14 = arith.constant 0 : index
    %c0_15 = arith.constant 0 : index
    %30 = vector.load %arg6[%c0_14, %c0_15] : memref<8x128xf32, #tpu.memory_space<vmem>>, vector<8x128xf32>
    %31 = arith.addf %30, %26 : vector<8x128xf32>
    %c0_16 = arith.constant 0 : index
    %c0_17 = arith.constant 0 : index
    %32 = vector.load %arg6[%c0_16, %c0_17] : memref<8x128xf32, #tpu.memory_space<vmem>>, vector<8x128xf32>
    tpu.vector_store %arg6[%c0_16, %c0_17], %31 {strides = array<i32>} : memref<8x128xf32, #tpu.memory_space<vmem>>, vector<8x128xf32>,
    return
  }
  func.func @transform_0(%arg0: i32, %arg1: i32, %arg2: i32) -> (i32, i32) {
    %c1_i32 = arith.constant 1 : i32
    %0 = arith.muli %arg0, %c1_i32 : i32
    %1 = arith.addi %0, %arg2 : i32
    %c0_i32 = arith.constant 0 : i32
    %2 = arith.minsi %1, %c0_i32 : i32
    %c0_i32_0 = arith.constant 0 : i32
    return %arg1, %2 : i32, i32
  }
  func.func @transform_1(%arg0: i32, %arg1: i32, %arg2: i32) -> (i32, i32) {
    %c1_i32 = arith.constant 1 : i32
    %0 = arith.muli %arg0, %c1_i32 : i32
    %1 = arith.addi %0, %arg2 : i32
    %c0_i32 = arith.constant 0 : i32
    %2 = arith.minsi %1, %c0_i32 : i32
    %c0_i32_0 = arith.constant 0 : i32
    return %arg1, %2 : i32, i32
  }
  func.func @transform_2(%arg0: i32, %arg1: i32, %arg2: i32) -> (i32, i32) {
    %c1_i32 = arith.constant 1 : i32
    %0 = arith.muli %arg0, %c1_i32 : i32
    %1 = arith.addi %0, %arg1 : i32
    %c0_i32 = arith.constant 0 : i32
    %c0_i32_0 = arith.constant 0 : i32
    return %1, %c0_i32 : i32, i32
  }
  func.func @transform_3(%arg0: i32, %arg1: i32, %arg2: i32) -> (i32, i32) {
    %c1_i32 = arith.constant 1 : i32
    %0 = arith.muli %arg0, %c1_i32 : i32
    %1 = arith.addi %0, %arg1 : i32
    %c0_i32 = arith.constant 0 : i32
    %c0_i32_0 = arith.constant 0 : i32
    return %1, %c0_i32 : i32, i32
  }
}

</mosaic_0001>

<bundles_post_ra>
// kernel: tpu_custom_call.1
= control target key start
LH: loop header
LB: loop body
LE: loop exit
PB: predicated region body
PF: predicated region fallthrough
CT: control target
= control target key end

     0   :  { %9 = vsyncpa [#allocation3], 0  ;;  %s378_s0 = inlined_call_operand.hbm [shape: f32[2,256], index: 0, kind: input, shape index: {}]   ;;  %s379_s1 = inlined_call_operand.hbm [shape: f32[2,256], index: 1, kind: input, shape index: {}]   ;;  %s380_s2 = inlined_call_operand.hbm [shape: f32[8,128], index: 2, kind: output, shape index: {0}]   ;;  %s381_s3 = inlined_call_operand.hbm [shape: f32[8,128], index: 3, kind: output, shape index: {1}]  }
   0x1   :  { %10 = vsyncpa [#allocation6], 0 }
   0x2   :  { %11 = vsyncpa [#allocation4], 0 }
   0x3   :  { %12 = vsyncpa [#allocation9], 0 }
   0x4   :  { %21 = vsyncadd [#allocation3], 192  ;;  %s303_s12 = smov [#allocation2]   ;;  %s207_s16 = scalar_lea.hbm %s378_s0, 64 }
   0x5   :  { %s24_s13 = sshll.u32 %s303_s12, 4  ;;  %p208_p0 = scmp.ne.s32.totalorder %s378_s0, %s207_s16  ;;  %s25_s13 = int_to_ptr.vmem [resolvable:$true] %s24_s13 }
   0x6   :  { %p211_p1 = scmp.lt.u32.totalorder %s207_s16, %s378_s0 }
   0x8   :  { %p213_p2 = pnand %p211_p1, %p208_p0 }
   0xa   :  { %216 = shalt.err (!%p213_p2)
}
   0xb   :  { %s217_s21 = scalar_lea.vmem %s25_s13, 64  ;;  %s221_s22 = scalar_lea.vmem %s25_s13, 256 }
   0xc   :  { %p218_p3 = scmp.ne.s32.totalorder %s25_s13, %s217_s21  ;;  %p222_p4 = scmp.lt.s32.totalorder %s25_s13, %s25_s13 }
   0xd   :  { %p223_p5 = scmp.lt.s32.totalorder %s221_s22, %s217_s21 }
   0xf   :  { %p224_p6 = por %p223_p5, %p222_p4 }
  0x11   :  { %p225_p7 = pnand %p224_p6, %p218_p3 }
  0x13   :  { %228 = shalt.err (!%p225_p7)
}
  0x14   :  { %s304_s23 = smov 64   ;;  %s305_s24 = smov 4  }
  0x15   :  { %30 = dma.hbm_to_vmem [thread:$0]  %s378_s0, 64, %s25_s13, [#allocation3], %s304_s23, %s304_s23, %s305_s24  }
  0x16   :  { %39 = vsyncadd [#allocation6], 192  ;;  %s306_s27 = smov [#allocation5]   ;;  %s229_s4 = scalar_lea.hbm %s379_s1, 64 }
  0x17   :  { %s42_s28 = sshll.u32 %s306_s27, 4  ;;  %p230_p8 = scmp.ne.s32.totalorder %s379_s1, %s229_s4  ;;  %s43_s28 = int_to_ptr.vmem [resolvable:$true] %s42_s28 }
  0x18   :  { %p233_p9 = scmp.lt.u32.totalorder %s229_s4, %s379_s1 }
  0x1a   :  { %p235_p10 = pnand %p233_p9, %p230_p8 }
  0x1c   :  { %238 = shalt.err (!%p235_p10)
}
  0x1d   :  { %s239_s9 = scalar_lea.vmem %s43_s28, 64  ;;  %s243_s0 = scalar_lea.vmem %s43_s28, 256 }
  0x1e   :  { %p240_p11 = scmp.ne.s32.totalorder %s43_s28, %s239_s9  ;;  %p244_p12 = scmp.lt.s32.totalorder %s43_s28, %s43_s28 }
  0x1f   :  { %p245_p13 = scmp.lt.s32.totalorder %s243_s0, %s239_s9 }
  0x21   :  { %p246_p0 = por %p245_p13, %p244_p12 }
  0x23   :  { %p247_p1 = pnand %p246_p0, %p240_p11 }
  0x25   :  { %250 = shalt.err (!%p247_p1)
}
  0x26   :  { %48 = dma.hbm_to_vmem [thread:$0]  %s379_s1, 64, %s43_s28, [#allocation6], %s304_s23, %s304_s23, %s305_s24  }
  0x27   :  { %295 = dma.done.wait [#allocation3], 256  }
  0x28   :  { %296 = vsyncadd [#allocation3], 4294967040 }
  0x29   :  { %297 = dma.done.wait [#allocation6], 256  }
  0x2a   :  { %298 = vsyncadd [#allocation6], 4294967040  ;;  %v71_v0 = vlaneseq  ;;  %v307_v1 = vmov 1983009808   ;;  %v77_v5 = vld [vmem:[#allocation2] sm:$0x3] }
  0x2b   :  { %v96_v2 = vunpack.c.l.s4 %v307_v1  ;;  %v78_v6 = vld [vmem:[#allocation2 + $0x4] sm:$0x3]  ;;  %v79_v7 = vld [vmem:[#allocation2 + $0x8] sm:$0x3]  ;;  %v80_v8 = vld [vmem:[#allocation2 + $0xc] sm:$0x3] }
  0x2c   :  { %v72_v3 = vshrl.u32 %v71_v0, 7  ;;  %v81_v9 = vld [vmem:[#allocation5] sm:$0x3]  ;;  %v82_v10 = vld [vmem:[#allocation5 + $0x4] sm:$0x3]  ;;  %s308_s1 = smov [#allocation8]  }
  0x2d   :  { %v97_v4 = vunpack.c.0.s8 %v96_v2  ;;  %v83_v11 = vld [vmem:[#allocation5 + $0x8] sm:$0x3]  ;;  %v84_v12 = vld [vmem:[#allocation5 + $0xc] sm:$0x3]  ;;  %v85_v13 = vsub.f32 %v77_v5, %v81_v9  ;;  %v86_v14 = vsub.f32 %v78_v6, %v82_v10  ;;  %v115_v16 = vld [vmem:[#allocation2 + $0x2] sm:$0x3] }
  0x2e   :  { %v87_v17 = vsub.f32 %v79_v7, %v83_v11  ;;  %v88_v18 = vsub.f32 %v80_v8, %v84_v12  ;;  %v116_v19 = vld [vmem:[#allocation2 + $0x6] sm:$0x3]  ;;  %v117_v20 = vld [vmem:[#allocation2 + $0xa] sm:$0x3]  ;;  %v118_v21 = vld [vmem:[#allocation2 + $0xe] sm:$0x3] }
  0x2f   :  { %v100_v15 = vsub.s32 %v97_v4, %v72_v3  ;;  %v93_v22 = vcombine.low %v85_v13, %v86_v14  ;;  %v119_v23 = vld [vmem:[#allocation5 + $0x2] sm:$0x3]  ;;  %v120_v24 = vld [vmem:[#allocation5 + $0x6] sm:$0x3]  ;;  %v121_v25 = vld [vmem:[#allocation5 + $0xa] sm:$0x3] }
  0x30   :  { %v94_v26 = vcombine.low %v87_v17, %v88_v18  ;;  %v122_v27 = vld [vmem:[#allocation5 + $0xe] sm:$0x3]  ;;  %v123_v28 = vsub.f32 %v115_v16, %v119_v23  ;;  %v124_v29 = vsub.f32 %v116_v19, %v120_v24  ;;  %v125_v30 = vsub.f32 %v117_v20, %v121_v25  ;;  %s181_s12 = sshll.u32 %s308_s1, 4  ;;  %s309_s13 = smov [#allocation7]   ;;  %s182_s12 = int_to_ptr.vmem [resolvable:$true] %s181_s12 }
  0x31   :  { %v101_v31 = vrot.slane %v93_v22, %v100_v15  ;;  %v126_v32 = vsub.f32 %v118_v21, %v122_v27  ;;  %vm76_vm0 = vcmp.lt.s32.totalorder %v72_v3, 2  ;;  %s168_s14 = sshll.u32 %s309_s13, 4  ;;  %s251_s15 = scalar_lea.vmem %s182_s12, 128  ;;  %s169_s14 = int_to_ptr.vmem [resolvable:$true] %s168_s14 }
  0x32   :  { %v108_v33 = vrot.slane %v94_v26, %v100_v15  ;;  %v131_v34 = vcombine.low %v123_v28, %v124_v29  ;;  %p252_p2 = scmp.ne.s32.totalorder %s182_s12, %s251_s15  ;;  %p256_p3 = scmp.lt.s32.totalorder %s182_s12, %s182_s12 }
  0x33   :  { %v132_v35 = vcombine.low %v125_v30, %v126_v32  ;;  %p257_p4 = scmp.lt.s32.totalorder %s251_s15, %s251_s15 }
  0x34   :  { %v109_v36 = vcombine.low %v101_v31, %v108_v33  ;;  %v139_v37 = vrot.slane %v131_v34, %v100_v15 }
  0x35   :  { %v146_v38 = vrot.slane %v132_v35, %v100_v15  ;;  %p258_p5 = por %p257_p4, %p256_p3 }
  0x36   :  { %v111_v39 = vsel %vm76_vm0, %v109_v36, 0.0 }
  0x37   :  { %v147_v40 = vcombine.low %v139_v37, %v146_v38  ;;  %v112_v41 = vmul.f32 %v111_v39, %v111_v39  ;;  %p259_p6 = pnand %p258_p5, %p252_p2 }
  0x39   :  { %v149_v42 = vsel %vm76_vm0, %v147_v40, 0.0 }
  0x3a   :  { %v150_v43 = vmul.f32 %v149_v42, %v149_v42  ;;  %v152_v44 = vadd.f32 %v149_v42, %v111_v39 }
  0x3c   :  { %v151_v45 = vadd.f32 %v150_v43, %v112_v41  ;;  %158 = vst [vmem:[#allocation8] sm:$0xff] %v152_v44 }
  0x3d   :  { %262 = shalt.err (!%p259_p6)
}
  0x3e   :  { %s263_s18 = scalar_lea.hbm %s381_s3, 128 }
  0x3f   :  { %p264_p7 = scmp.ne.s32.totalorder %s381_s3, %s263_s18  ;;  %p267_p8 = scmp.lt.u32.totalorder %s263_s18, %s381_s3 }
  0x41   :  { %p269_p9 = pnand %p267_p8, %p264_p7 }
  0x43   :  { %272 = shalt.err (!%p269_p9)
}
  0x44   :  { %184 = dma.vmem_to_hbm [thread:$0]  %s182_s12, 128, %s381_s3, [#allocation9]   ;;  %155 = vst [vmem:[#allocation7] sm:$0xff] %v151_v45 }
  0x45   :  { %s273_s25 = scalar_lea.vmem %s169_s14, 128  ;;  %p278_p11 = scmp.lt.s32.totalorder %s169_s14, %s169_s14 }
  0x46   :  { %p274_p10 = scmp.ne.s32.totalorder %s169_s14, %s273_s25  ;;  %p279_p12 = scmp.lt.s32.totalorder %s273_s25, %s273_s25 }
  0x48   :  { %p280_p13 = por %p279_p12, %p278_p11 }
  0x4a   :  { %p281_p0 = pnand %p280_p13, %p274_p10 }
  0x4c   :  { %284 = shalt.err (!%p281_p0)
}
  0x4d   :  { %s285_s28 = scalar_lea.hbm %s380_s2, 128 }
  0x4e   :  { %p286_p1 = scmp.ne.s32.totalorder %s380_s2, %s285_s28  ;;  %p289_p2 = scmp.lt.u32.totalorder %s285_s28, %s380_s2 }
  0x50   :  { %p291_p3 = pnand %p289_p2, %p286_p1 }
  0x52   :  { %294 = shalt.err (!%p291_p3)
}
  0x53   :  { %171 = dma.vmem_to_hbm [thread:$0]  %s169_s14, 128, %s380_s2, [#allocation4]  }
  0x54   :  { %299 = dma.done.wait [#allocation4], 128  }
  0x55   :  { %300 = vsyncadd [#allocation4], 4294967168 }
  0x56   :  { %301 = dma.done.wait [#allocation9], 128  }
  0x57   :  { %302 = vsyncadd [#allocation9], 4294967168 }
  0x58   :  { %191 = vsyncpa [#allocation3], 1 }
  0x59   :  { %192 = vsyncpa [#allocation6], 1 }
  0x5a   :  { %193 = vsyncpa [#allocation4], 1 }
  0x5b   :  { %194 = vsyncpa [#allocation9], 1 }

</bundles_post_ra>
